<compile_context>
chip_gen: v6e
topology: v6e:2x2x1
jax: 0.10.0
libtpu: 0.0.40
codegen_flags: <defaults>
</compile_context>

<pallas_src>
import functools

import jax
import jax.numpy as jnp
from jax.experimental import pallas as pl
from jax.experimental.pallas import tpu as pltpu

_SUBLANE = 8


def _round_up(v: int, m: int) -> int:
    return ((v + m - 1) // m) * m


# ---------------------------------------------------------------------------
# Kernel: one MXU matmul + broadcast bias add per row tile.
# ---------------------------------------------------------------------------
def _affine_matmul_kernel(x_ref, w_ref, b_ref, o_ref, *, precision):
    acc = jnp.dot(x_ref[...], w_ref[...],
                  preferred_element_type=jnp.float32,
                  precision=precision)
    o_ref[...] = (acc + b_ref[...]).astype(o_ref.dtype)


# ---------------------------------------------------------------------------
# One-time parameter folding (these are static buffers in the PyTorch module,
# so this is prep cost, not per-call cost).  No output padding anymore.
# ---------------------------------------------------------------------------
def prepare_pca_whitening_params(x_mean, eigvec, variance_sqrt, featrange,
                                 featmin, *, inverse: bool, minmax: bool):
    eigvec = jnp.asarray(eigvec, jnp.float32)       # (K, F)
    x_mean = jnp.asarray(x_mean, jnp.float32)       # (F,)
    vsq = jnp.asarray(variance_sqrt, jnp.float32)   # (K,)
    frange = jnp.asarray(featrange, jnp.float32)    # (K,)
    fmin = jnp.asarray(featmin, jnp.float32)        # (K,)

    if inverse:
        # out = (frange*(x+1)/2 + fmin) * vsq @ eigvec + mean
        row_scale = (frange * vsq * 0.5) if minmax else vsq
        w = eigvec * row_scale[:, None]                                  # (K, F)
        if minmax:
            bias = ((frange * 0.5 + fmin) * vsq) @ eigvec + x_mean       # (F,)
        else:
            bias = x_mean
    else:
        # out = 2*((x-mean)@eigvec.T / vsq - fmin)/frange - 1
        col_scale = (2.0 / (vsq * frange)) if minmax else (1.0 / vsq)
        w = eigvec.T * col_scale[None, :]                                # (F, K)
        bias = -(x_mean @ w)                                             # (K,)
        if minmax:
            bias = bias - (2.0 * fmin / frange + 1.0)

    return w, bias.reshape(1, -1)   # bias kept f32 for an accurate add


# ---------------------------------------------------------------------------
# Apply: tiled over the sample axis, w'/bias VMEM-resident, no padding copies.
# ---------------------------------------------------------------------------
def pca_whitening_apply(x, w, bias_row, *, row_tile: int = 4096,
                        min_grid_steps: int = 2, precision=None):
    x = jnp.asarray(x)
    if x.dtype not in (jnp.bfloat16, jnp.float32):
        x = x.astype(jnp.float32)
    N, in_feat = x.shape
    in_feat_w, out_feat = w.shape
    assert in_feat == in_feat_w, (in_feat, in_feat_w)

    # Cast the (tiny, VMEM-resident) weight to the compute dtype; bias stays f32.
    w_k = w.astype(x.dtype)
    b_k = bias_row

    # Row tile: multiple of 8 (sublane), capped at row_tile.  For moderate N also
    # capped near N/2 so the "parallel" grid has >= min_grid_steps steps (keeps both
    # v7x TensorCores busy).  Even at tn=4096 the per-step working set (x 0.5 MiB,
    # out <0.5 MiB, w ~4 KiB, double-buffered) is far inside the scoped-VMEM default
    # on v5e (16 MiB) / v6e / v7x (32 MiB), so no vmem_limit_bytes override is needed.
    tn = min(row_tile, _round_up(max(N, 1), _SUBLANE))
    if N > _SUBLANE * min_grid_steps:
        tn = min(tn, _round_up(pl.cdiv(N, min_grid_steps), _SUBLANE))
    grid = (pl.cdiv(N, tn),)   # ragged last block handled by Pallas (rows independent)

    kernel = functools.partial(_affine_matmul_kernel, precision=precision)

    out = pl.pallas_call(
        kernel,
        out_shape=jax.ShapeDtypeStruct((N, out_feat), x.dtype),
        grid_spec=pltpu.PrefetchScalarGridSpec(
            num_scalar_prefetch=0,
            grid=grid,
            in_specs=[
                pl.BlockSpec((tn, in_feat), lambda i: (i, 0)),        # x row tile
                pl.BlockSpec((in_feat, out_feat), lambda i: (0, 0)),  # w' resident
                pl.BlockSpec((1, out_feat), lambda i: (0, 0)),        # bias resident
            ],
            out_specs=pl.BlockSpec((tn, out_feat), lambda i: (i, 0)),
        ),
        compiler_params=pltpu.CompilerParams(
            dimension_semantics=("parallel",)),
    )(x, w_k, b_k)

    return out


# Convenience wrapper mirroring PCAWhitening.forward.
def pca_whitening_forward(x, x_mean, eigvec, variance_sqrt, featrange, featmin,
                          *, inverse: bool = False, minmax: bool = True,
                          row_tile: int = 4096, precision=None):
    w, bias_row = prepare_pca_whitening_params(
        x_mean, eigvec, variance_sqrt, featrange, featmin,
        inverse=inverse, minmax=minmax)
    return pca_whitening_apply(x, w, bias_row, row_tile=row_tile,
                               precision=precision)


# ---------------------------------------------------------------------------
# Pure-JAX reference (mirrors the PyTorch forward exactly).
# ---------------------------------------------------------------------------
def _reference_forward(x, x_mean, eigvec, variance_sqrt, featrange, featmin,
                       *, inverse=False, minmax=True):
    if inverse:
        xb = featrange * ((x + 1.0) / 2.0) + featmin if minmax else x
        rot = xb * variance_sqrt
        return jnp.matmul(rot, eigvec) + x_mean
    else:
        rot = jnp.matmul(x - x_mean, eigvec.T)
        unscaled = rot / variance_sqrt
        if minmax:
            return 2.0 * (unscaled - featmin) / featrange - 1.0
        return unscaled


if __name__ == "__main__":
    # Small shapes consistent with the module: nsamples=8, nfeatures=32, dof=6.
    N, F, DOF = 8, 32, 6
    K = F - DOF  # keepdims = 26

    key = jax.random.PRNGKey(0)
    k_x, k_mean, k_vec, k_vsq, k_rng, k_min = jax.random.split(key, 6)

    # Deterministic synthetic "PCA" buffers (same shapes as PCAWhitening buffers).
    x = jax.random.normal(k_x, (N, F), dtype=jnp.float32)
    x_mean = jax.random.normal(k_mean, (F,), dtype=jnp.float32)
    eigvec = jax.random.normal(k_vec, (K, F), dtype=jnp.float32)
    variance_sqrt = jax.random.uniform(k_vsq, (K,), dtype=jnp.float32,
                                       minval=0.5, maxval=2.0)
    featrange = jax.random.uniform(k_rng, (K,), dtype=jnp.float32,
                                   minval=1.0, maxval=3.0)
    featmin = jax.random.normal(k_min, (K,), dtype=jnp.float32)

    # Forward (whitening) path: inverse=False, minmax=True (module defaults).
    out = pca_whitening_forward(x, x_mean, eigvec, variance_sqrt, featrange,
                                featmin, inverse=False, minmax=True)
    out = jax.block_until_ready(out)
    ref = _reference_forward(x, x_mean, eigvec, variance_sqrt, featrange,
                             featmin, inverse=False, minmax=True)
    assert out.shape == (N, K)
    assert jnp.allclose(out, ref, atol=1e-4, rtol=1e-4)

    # Inverse (unwhitening) path on the whitened output.
    out_inv = pca_whitening_forward(out, x_mean, eigvec, variance_sqrt,
                                    featrange, featmin, inverse=True,
                                    minmax=True)
    out_inv = jax.block_until_ready(out_inv)
    ref_inv = _reference_forward(out, x_mean, eigvec, variance_sqrt, featrange,
                                 featmin, inverse=True, minmax=True)
    assert out_inv.shape == (N, F)
    assert jnp.allclose(out_inv, ref_inv, atol=1e-4, rtol=1e-4)

    # minmax=False variant to cover the other module config.
    out_nm = pca_whitening_forward(x, x_mean, eigvec, variance_sqrt, featrange,
                                   featmin, inverse=False, minmax=False)
    ref_nm = _reference_forward(x, x_mean, eigvec, variance_sqrt, featrange,
                                featmin, inverse=False, minmax=False)
    assert jnp.allclose(jax.block_until_ready(out_nm), ref_nm,
                        atol=1e-4, rtol=1e-4)

    # Ragged-N path: no row padding, grid split near N/2 (2 steps -> both v7x TCs).
    xN = jax.random.normal(jax.random.PRNGKey(1), (1037, F), dtype=jnp.float32)
    outN = pca_whitening_forward(xN, x_mean, eigvec, variance_sqrt, featrange,
                                 featmin, inverse=False, minmax=True)
    refN = _reference_forward(xN, x_mean, eigvec, variance_sqrt, featrange,
                              featmin, inverse=False, minmax=True)
    assert outN.shape == (1037, K)
    assert jnp.allclose(jax.block_until_ready(outN), refN,
                        atol=1e-4, rtol=1e-4)

    # Large-N path: exercises the 4096-row tile cap with multiple grid steps.
    xL = jax.random.normal(jax.random.PRNGKey(2), (9000, F), dtype=jnp.float32)
    outL = pca_whitening_forward(xL, x_mean, eigvec, variance_sqrt, featrange,
                                 featmin, inverse=False, minmax=True)
    refL = _reference_forward(xL, x_mean, eigvec, variance_sqrt, featrange,
                              featmin, inverse=False, minmax=True)
    assert jnp.allclose(jax.block_until_ready(outL), refL,
                        atol=1e-4, rtol=1e-4)

    # bf16 dtype path: x stays bf16, w cast to bf16, f32 accumulate, bf16 output
    # (loose tolerance: bf16 has ~8 mantissa bits).
    xB = jax.random.normal(jax.random.PRNGKey(3), (64, F),
                           dtype=jnp.float32).astype(jnp.bfloat16)
    outB = pca_whitening_forward(xB, x_mean, eigvec, variance_sqrt, featrange,
                                 featmin, inverse=False, minmax=True)
    outB = jax.block_until_ready(outB)
    assert outB.dtype == jnp.bfloat16
    refB = _reference_forward(xB.astype(jnp.float32), x_mean, eigvec,
                              variance_sqrt, featrange, featmin,
                              inverse=False, minmax=True)
    assert jnp.allclose(outB.astype(jnp.float32), refB, atol=5e-1, rtol=5e-2)

    print("KERNEL_OK")
</pallas_src>

<mosaic_0001>
module attributes {stable_mosaic.version = 11 : i64} {
  func.func @_affine_matmul_kernel(%arg0: i32, %arg1: memref<8x32xf32, #tpu.memory_space<vmem>>, %arg2: memref<32x26xf32, #tpu.memory_space<vmem>>, %arg3: memref<1x26xf32, #tpu.memory_space<vmem>>, %arg4: memref<8x26xf32, #tpu.memory_space<vmem>>) attributes {dimension_semantics = [#tpu.dimension_semantics<parallel>], iteration_bounds = array<i64: 1>, scalar_prefetch = 0 : i64, scratch_operands = 0 : i64, tpu.core_type = #tpu.core_type<tc>, window_params = [{transform_indices = @transform_0, window_bounds = array<i64: 8, 32>}, {pipeline_mode = #tpu.pipeline_mode<synchronous>, transform_indices = @transform_1, window_bounds = array<i64: 32, 26>}, {pipeline_mode = #tpu.pipeline_mode<synchronous>, transform_indices = @transform_2, window_bounds = array<i64: 1, 26>}, {transform_indices = @transform_3, window_bounds = array<i64: 8, 26>}]} {
    %c0 = arith.constant 0 : index
    %c0_0 = arith.constant 0 : index
    %0 = vector.load %arg1[%c0, %c0_0] : memref<8x32xf32, #tpu.memory_space<vmem>>, vector<8x32xf32>
    %c0_1 = arith.constant 0 : index
    %c0_2 = arith.constant 0 : index
    %1 = vector.load %arg2[%c0_1, %c0_2] : memref<32x26xf32, #tpu.memory_space<vmem>>, vector<32x26xf32>
    %cst = arith.constant dense<0.000000e+00> : vector<8x26xf32>
    %2 = tpu.matmul %0, %1, %cst {dimension_numbers = #tpu.dot_dimension_numbers<[1], [0], [0], [1], [0, 0, 1, 1], [], []>} : vector<8x32xf32>, vector<32x26xf32>, vector<8x26xf32> -> vector<8x26xf32>
    %c0_3 = arith.constant 0 : index
    %c0_4 = arith.constant 0 : index
    %3 = vector.load %arg3[%c0_3, %c0_4] : memref<1x26xf32, #tpu.memory_space<vmem>>, vector<1x26xf32>
    %4 = vector.broadcast %3 : vector<1x26xf32> to vector<8x26xf32>
    %5 = arith.addf %2, %4 : vector<8x26xf32>
    %c0_5 = arith.constant 0 : index
    %c0_6 = arith.constant 0 : index
    %6 = vector.load %arg4[%c0_5, %c0_6] : memref<8x26xf32, #tpu.memory_space<vmem>>, vector<8x26xf32>
    tpu.vector_store %arg4[%c0_5, %c0_6], %5 {strides = array<i32>} : memref<8x26xf32, #tpu.memory_space<vmem>>, vector<8x26xf32>,
    return
  }
  func.func @transform_0(%arg0: i32) -> (i32, i32) {
    %c0_i32 = arith.constant 0 : i32
    %c0_i32_0 = arith.constant 0 : i32
    return %arg0, %c0_i32 : i32, i32
  }
  func.func @transform_1(%arg0: i32) -> (i32, i32) {
    %c0_i32 = arith.constant 0 : i32
    %c0_i32_0 = arith.constant 0 : i32
    %c0_i32_1 = arith.constant 0 : i32
    return %c0_i32, %c0_i32_0 : i32, i32
  }
  func.func @transform_2(%arg0: i32) -> (i32, i32) {
    %c0_i32 = arith.constant 0 : i32
    %c0_i32_0 = arith.constant 0 : i32
    %c0_i32_1 = arith.constant 0 : i32
    return %c0_i32, %c0_i32_0 : i32, i32
  }
  func.func @transform_3(%arg0: i32) -> (i32, i32) {
    %c0_i32 = arith.constant 0 : i32
    %c0_i32_0 = arith.constant 0 : i32
    return %arg0, %c0_i32 : i32, i32
  }
}

</mosaic_0001>

<bundles_post_ra>
// kernel: tpu_custom_call.1
= control target key start
LH: loop header
LB: loop body
LE: loop exit
PB: predicated region body
PF: predicated region fallthrough
CT: control target
= control target key end

     0   :  { %8 = vsyncpa [#allocation3], 0  ;;  %s275_s0 = inlined_call_operand.hbm [shape: f32[8,32], index: 0, kind: input, shape index: {}]   ;;  %s276_s1 = inlined_call_operand.hbm [shape: f32[32,26], index: 1, kind: input, shape index: {}]   ;;  %s277_s2 = inlined_call_operand.vmem [shape: f32[1,26], index: 2, kind: input, shape index: {}]   ;;  %s278_s3 = inlined_call_operand.hbm [shape: f32[8,26], index: 3, kind: output, shape index: {}]  }
   0x1   :  { %9 = vsyncpa [#allocation6], 0 }
   0x2   :  { %10 = vsyncpa [#allocation4], 0  ;;  %s236_s12 = smov [#allocation2]   ;;  %s237_s14 = smov [#allocation5]  }
   0x3   :  { %s17_s13 = sshll.u32 %s236_s12, 4  ;;  %s26_s15 = sshll.u32 %s237_s14, 4  ;;  %s18_s13 = int_to_ptr.vmem [resolvable:$true] %s17_s13  ;;  %s27_s15 = int_to_ptr.vmem [resolvable:$true] %s26_s15 }
   0x4   :  { %s178_s16 = scalar_lea.vmem %s18_s13, 128  ;;  %p183_p1 = scmp.lt.s32.totalorder %s18_s13, %s18_s13 }
   0x5   :  { %p179_p0 = scmp.ne.s32.totalorder %s18_s13, %s178_s16  ;;  %p184_p2 = scmp.lt.s32.totalorder %s178_s16, %s178_s16 }
   0x7   :  { %p185_p3 = por %p184_p2, %p183_p1 }
   0x9   :  { %p186_p4 = pnand %p185_p3, %p179_p0 }
   0xb   :  { %189 = shalt.err (!%p186_p4)
}
   0xc   :  { %20 = dma.hbm_to_vmem [thread:$0]  %s275_s0, 128, %s18_s13, [#allocation3]  }
   0xd   :  { %s198_s19 = scalar_lea.vmem %s27_s15, 512  ;;  %p203_p6 = scmp.lt.s32.totalorder %s27_s15, %s27_s15 }
   0xe   :  { %p199_p5 = scmp.ne.s32.totalorder %s27_s15, %s198_s19  ;;  %p204_p7 = scmp.lt.s32.totalorder %s198_s19, %s198_s19 }
  0x10   :  { %p205_p8 = por %p204_p7, %p203_p6 }
  0x12   :  { %p206_p9 = pnand %p205_p8, %p199_p5 }
  0x14   :  { %209 = shalt.err (!%p206_p9)
}
  0x15   :  { %s238_s20 = smov 128   ;;  %s239_s21 = smov 8  }
  0x16   :  { %32 = dma.hbm_to_vmem [thread:$0]  %s276_s1, 512, %s27_s15, [#allocation6], %s238_s20, %s238_s20, %s239_s21  }
  0x17   :  { %230 = dma.done.wait [#allocation3], 128  }
  0x18   :  { %231 = vsyncadd [#allocation3], 4294967168 }
  0x19   :  { %232 = dma.done.wait [#allocation6], 512  }
  0x1a   :  { %233 = vsyncadd [#allocation6], 4294966784  ;;  %v240_v0 = vmov 0.0   ;;  %vm241_vm0 = vmmov 0   ;;  %v45_v1 = vld [vmem:[#allocation5 + $0x18] sm:$0xff]  ;;  %v44_v2 = vld [vmem:[#allocation5 + $0x10] sm:$0xff] }
  0x1b   :  { %152 = vmatprep.subr.mxu0 %v240_v0  ;;  %160 = vmatprep.mubr.msk.f32.mxu0 %vm241_vm0, %v240_v0  ;;  %v43_v3 = vld [vmem:[#allocation5 + $0x8] sm:$0xff]  ;;  %v42_v4 = vld [vmem:[#allocation5] sm:$0xff]  ;;  %v41_v5 = vld [vmem:[#allocation2] sm:$0xff]  ;;  %vm53_vm1 = vcmask 261120   ;;  %s242_s24 = smov [#allocation7]   ;;  %vm127_vm2 = vcmask 211968  }
  0x1c   :  { %153 = vmatpush3.msra.mxu0 %v45_v1  ;;  %v145_v6 = vld [vmem:[%s277_s2] ss:$0 sm:$0xff]  ;;  %s135_s25 = sshll.u32 %s242_s24, 4  ;;  %s136_s25 = int_to_ptr.vmem [resolvable:$true] %s135_s25 }
  0x1d   :  { %154 = vmatprep.subr.mxu0 %v240_v0  ;;  %s210_s26 = scalar_lea.vmem %s136_s25, 128  ;;  %p215_p11 = scmp.lt.s32.totalorder %s136_s25, %s136_s25 }
  0x1e   :  { %155 = vmatpush3.msra.mxu0 %v44_v2  ;;  %p211_p10 = scmp.ne.s32.totalorder %s136_s25, %s210_s26  ;;  %p216_p12 = scmp.lt.s32.totalorder %s210_s26, %s210_s26 }
  0x1f   :  { %156 = vmatprep.subr.mxu0 %v240_v0 }
  0x20   :  { %157 = vmatpush3.msra.mxu0 %v43_v3  ;;  %p217_p13 = por %p216_p12, %p215_p11 }
  0x21   :  { %158 = vmatprep.subr.mxu0 %v240_v0 }
  0x22   :  { %159 = vmatpush3.msra.mxu0 %v42_v4  ;;  %p218_p0 = pnand %p217_p13, %p211_p10 }
  0x23   :  { %161 = vmatmul.mubr.msk.f32.vlgmr.msra.gmra.mxu0 %vm53_vm1, %v41_v5 }
  0xe3   :  { %v123_v7 = vpop.f32.mrf.mxu0 }
  0xe4   :  { %v124_v8 = vadd.f32 %v145_v6, %v123_v7 }
  0xe5   :  { %v162_v9 = vpop.f32.mrf.mxu0 }
  0xe6   :  { %128 = vst.msk [vmem:[#allocation7] sm:$0xff] %vm127_vm2, %v124_v8 }
  0xe7   :  { %221 = shalt.err (!%p218_p0)
}
  0xe8   :  { %138 = dma.vmem_to_hbm [thread:$0]  %s136_s25, 128, %s278_s3, [#allocation4]  }
  0xe9   :  { %234 = dma.done.wait [#allocation4], 128  }
  0xea   :  { %235 = vsyncadd [#allocation4], 4294967168 }
  0xeb   :  { %142 = vsyncpa [#allocation3], 1 }
  0xec   :  { %143 = vsyncpa [#allocation6], 1 }
  0xed   :  { %144 = vsyncpa [#allocation4], 1 }

</bundles_post_ra>
